<compile_context>
chip_gen: v5e
topology: v5e:2x2
jax: 0.10.0
libtpu: 0.0.40
codegen_flags: <defaults>
</compile_context>

<pallas_src>
import functools

import jax
import jax.numpy as jnp
from jax.experimental import pallas as pl
from jax.experimental.pallas import tpu as pltpu


def _round_up(v, m):
    return (v + m - 1) // m * m


def _conv3d_mish_tanh_kernel(x9_ref, w_ref, b_ref, o_ref, *, k, hw, s_tile):
    """One grid step == (batch b, spatial tile s).

    x9_ref: (k*k*Cin_p, S_x9)   9 in-plane-shifted input copies, rows ordered
                                (kh, kw, ci); lane dim padded so kd shifts fit.
    w_ref : (k, Cout_p, k*k*Cin_p) weights, kd-major; per-kd cols = (kh,kw,ci).
    b_ref : (Cout_p, 1)         bias.
    o_ref : (Cout_p, S_tile)    lane-dense output tile (halo cropped outside).
    """
    base = pl.program_id(1) * s_tile           # multiple of 128 by construction

    # ---- 3 accumulated MXU dots over lane-aligned kd-shifted slices ----
    acc = None
    for kd in range(k):
        off = base + kd * hw
        if (kd * hw) % 128 == 0:
            off = pl.multiple_of(off, 128)
        part = jnp.dot(w_ref[kd], x9_ref[:, pl.ds(off, s_tile)],
                       preferred_element_type=jnp.float32)
        acc = part if acc is None else acc + part

    z = acc + b_ref[...]                        # lane-broadcast bias

    # ---- tanh(mish(z)): tanh(softplus(z)) = 1 - 2/((1+e^z)^2 + 1) ----
    e = jnp.exp(z)
    t = 1.0 + e
    tanh_sp = 1.0 - 2.0 / (t * t + 1.0)         # overflow-safe, exact
    o_ref[...] = jnp.tanh(z * tanh_sp).astype(o_ref.dtype)


def prepare_conv_params(weight, bias, kernel_size):
    """One-time parameter preprocessing (hoisted out of the forward path)."""
    Cout, Cin = weight.shape[0], weight.shape[1]
    k = kernel_size
    Cin_p = _round_up(Cin, 8)
    Cout_p = _round_up(Cout, 8)
    w_p = jnp.pad(weight, ((0, Cout_p - Cout), (0, Cin_p - Cin),
                           (0, 0), (0, 0), (0, 0)))
    # (Cout_p, Cin_p, kd, kh, kw) -> (kd, Cout_p, kh, kw, Cin_p) -> (k, Cout_p, k*k*Cin_p)
    w_m = jnp.transpose(w_p, (2, 0, 3, 4, 1)).reshape(k, Cout_p, k * k * Cin_p)
    b_m = jnp.pad(bias, (0, Cout_p - Cout)).reshape(Cout_p, 1)
    return w_m, b_m


@functools.partial(jax.jit, static_argnames=("kernel_size", "out_channels"))
def conv3d_mish_tanh(x, w_m, b_m, kernel_size, out_channels):
    """x: (B, Cin, D, H, W) f32; w_m/b_m from prepare_conv_params."""
    B, Cin, D, H, W = x.shape
    k = kernel_size
    Cout = out_channels
    Cin_p = _round_up(Cin, 8)
    Cout_p = w_m.shape[1]
    Do, Ho, Wo = D - k + 1, H - k + 1, W - k + 1

    S = D * H * W
    HW = H * W
    S_tile = min(1024, _round_up(S, 128))       # lanes per activation chunk
    n_s = -(-S // S_tile)
    S_out = n_s * S_tile
    S_x9 = _round_up(S_out + (k - 1) * HW, 128)  # per-copy length incl. kd halo
    max_inplane = (k - 1) * (W + 1)              # largest kh*W + kw shift
    S_src = max_inplane + S_x9

    # --- input glue: flatten spatial, pad channels->8, pad for shifts ---
    x_flat = x.reshape(B, Cin, S)
    x_pad = jnp.pad(x_flat, ((0, 0), (0, Cin_p - Cin), (0, S_src - S)))

    # --- pre-build the 9 (kh,kw)-shifted copies (lane-misaligned shifts done
    #     once here by XLA instead of 24 misaligned VMEM copies per batch) ---
    shifted = [jax.lax.slice_in_dim(x_pad, kh * W + kw, kh * W + kw + S_x9, axis=2)
               for kh in range(k) for kw in range(k)]
    x9 = jnp.concatenate(shifted, axis=1)        # (B, k*k*Cin_p, S_x9)

    kernel = functools.partial(_conv3d_mish_tanh_kernel,
                               k=k, hw=HW, s_tile=S_tile)

    out_full = pl.pallas_call(
        kernel,
        out_shape=jax.ShapeDtypeStruct((B, Cout_p, S_out), jnp.float32),
        grid_spec=pltpu.PrefetchScalarGridSpec(
            num_scalar_prefetch=0,
            grid=(B, n_s),
            in_specs=[
                # per-batch shifted input, resident across the spatial axis
                pl.BlockSpec((None, k * k * Cin_p, S_x9), lambda b, s: (b, 0, 0)),
                # resident weights / bias
                pl.BlockSpec((k, Cout_p, k * k * Cin_p), lambda b, s: (0, 0, 0)),
                pl.BlockSpec((Cout_p, 1), lambda b, s: (0, 0)),
            ],
            out_specs=pl.BlockSpec((None, Cout_p, S_tile), lambda b, s: (b, 0, s)),
        ),
        compiler_params=pltpu.CompilerParams(
            dimension_semantics=("parallel", "parallel")),
    )(x9, w_m, b_m)

    # Crop padded channels / spatial padding / halo; restore NCDHW layout.
    out = out_full[:, :Cout, :S].reshape(B, Cout, D, H, W)
    return out[:, :, :Do, :Ho, :Wo]


def reference(x, weight, bias, kernel_size):
    # Pure-JAX reference (Conv3d valid + mish + tanh).
    dn = jax.lax.conv_dimension_numbers(x.shape, weight.shape,
                                        ("NCDHW", "OIDHW", "NCDHW"))
    y = jax.lax.conv_general_dilated(x, weight, (1, 1, 1), "VALID",
                                     dimension_numbers=dn)
    y = y + bias.reshape(1, -1, 1, 1, 1)
    mish = y * jnp.tanh(jnp.log(1.0 + jnp.exp(y)))
    return jnp.tanh(mish)


if __name__ == "__main__":
    key = jax.random.PRNGKey(0)
    k1, k2, k3, _ = jax.random.split(key, 4)

    B, Cin, Cout, D, H, W, ksize = 2, 4, 8, 16, 16, 16, 3

    x = jax.random.normal(k1, (B, Cin, D, H, W), dtype=jnp.float32)
    # Deterministic "PyTorch-like" init: uniform(-bound, bound), bound = 1/sqrt(fan_in)
    fan_in = Cin * ksize ** 3
    bound = 1.0 / (fan_in ** 0.5)
    weight = jax.random.uniform(k2, (Cout, Cin, ksize, ksize, ksize),
                                minval=-bound, maxval=bound, dtype=jnp.float32)
    bias = jax.random.uniform(k3, (Cout,), minval=-bound, maxval=bound,
                              dtype=jnp.float32)

    # One-time parameter preprocessing (outside the per-call forward).
    w_m, b_m = prepare_conv_params(weight, bias, ksize)
    w_m, b_m = jax.block_until_ready((w_m, b_m))

    out = conv3d_mish_tanh(x, w_m, b_m, ksize, Cout)
    out = jax.block_until_ready(out)

    ref = reference(x, weight, bias, ksize)
    assert out.shape == (B, Cout, D - ksize + 1, H - ksize + 1, W - ksize + 1)
    assert jnp.allclose(out, ref, atol=2e-5, rtol=2e-5), "mismatch vs reference"

    print("KERNEL_OK")
</pallas_src>

<mosaic_0001>
module attributes {stable_mosaic.version = 11 : i64} {
  func.func @_conv3d_mish_tanh_kernel(%arg0: i32, %arg1: i32, %arg2: memref<1x72x4608xf32, #tpu.memory_space<vmem>>, %arg3: memref<3x8x72xf32, #tpu.memory_space<vmem>>, %arg4: memref<8x1xf32, #tpu.memory_space<vmem>>, %arg5: memref<1x8x1024xf32, #tpu.memory_space<vmem>>) attributes {dimension_semantics = [#tpu.dimension_semantics<parallel>, #tpu.dimension_semantics<parallel>], iteration_bounds = array<i64: 2, 4>, scalar_prefetch = 0 : i64, scratch_operands = 0 : i64, tpu.core_type = #tpu.core_type<tc>, window_params = [{transform_indices = @transform_0, window_bounds = array<i64: 1, 72, 4608>}, {pipeline_mode = #tpu.pipeline_mode<synchronous>, transform_indices = @transform_1, window_bounds = array<i64: 3, 8, 72>}, {pipeline_mode = #tpu.pipeline_mode<synchronous>, transform_indices = @transform_2, window_bounds = array<i64: 8, 1>}, {transform_indices = @transform_3, window_bounds = array<i64: 1, 8, 1024>}]} {
    %c1024_i32 = arith.constant 1024 : i32
    %0 = arith.muli %arg1, %c1024_i32 : i32
    %c0_i32 = arith.constant 0 : i32
    %1 = arith.addi %0, %c0_i32 : i32
    %2 = tpu.assume_multiple %1, 128 : i32
    %c0 = arith.constant 0 : index
    %c0_0 = arith.constant 0 : index
    %c0_1 = arith.constant 0 : index
    %3 = vector.load %arg3[%c0, %c0_0, %c0_1] : memref<3x8x72xf32, #tpu.memory_space<vmem>>, vector<1x8x72xf32>
    %4 = vector.shape_cast %3 : vector<1x8x72xf32> to vector<8x72xf32>
    %c0_2 = arith.constant 0 : index
    %c0_3 = arith.constant 0 : index
    %5 = arith.index_cast %2 : i32 to index
    %6 = vector.load %arg2[%c0_2, %c0_3, %5] : memref<1x72x4608xf32, #tpu.memory_space<vmem>>, vector<1x72x1024xf32>
    %7 = vector.shape_cast %6 : vector<1x72x1024xf32> to vector<72x1024xf32>
    %cst = arith.constant dense<0.000000e+00> : vector<8x1024xf32>
    %8 = tpu.matmul %4, %7, %cst {dimension_numbers = #tpu.dot_dimension_numbers<[1], [0], [0], [1], [0, 0, 1, 1], [], []>} : vector<8x72xf32>, vector<72x1024xf32>, vector<8x1024xf32> -> vector<8x1024xf32>
    %c256_i32 = arith.constant 256 : i32
    %9 = arith.addi %0, %c256_i32 : i32
    %10 = tpu.assume_multiple %9, 128 : i32
    %c1 = arith.constant 1 : index
    %c0_4 = arith.constant 0 : index
    %c0_5 = arith.constant 0 : index
    %11 = vector.load %arg3[%c1, %c0_4, %c0_5] : memref<3x8x72xf32, #tpu.memory_space<vmem>>, vector<1x8x72xf32>
    %12 = vector.shape_cast %11 : vector<1x8x72xf32> to vector<8x72xf32>
    %c0_6 = arith.constant 0 : index
    %c0_7 = arith.constant 0 : index
    %13 = arith.index_cast %10 : i32 to index
    %14 = vector.load %arg2[%c0_6, %c0_7, %13] : memref<1x72x4608xf32, #tpu.memory_space<vmem>>, vector<1x72x1024xf32>
    %15 = vector.shape_cast %14 : vector<1x72x1024xf32> to vector<72x1024xf32>
    %cst_8 = arith.constant dense<0.000000e+00> : vector<8x1024xf32>
    %16 = tpu.matmul %12, %15, %cst_8 {dimension_numbers = #tpu.dot_dimension_numbers<[1], [0], [0], [1], [0, 0, 1, 1], [], []>} : vector<8x72xf32>, vector<72x1024xf32>, vector<8x1024xf32> -> vector<8x1024xf32>
    %17 = arith.addf %8, %16 : vector<8x1024xf32>
    %c512_i32 = arith.constant 512 : i32
    %18 = arith.addi %0, %c512_i32 : i32
    %19 = tpu.assume_multiple %18, 128 : i32
    %c2 = arith.constant 2 : index
    %c0_9 = arith.constant 0 : index
    %c0_10 = arith.constant 0 : index
    %20 = vector.load %arg3[%c2, %c0_9, %c0_10] : memref<3x8x72xf32, #tpu.memory_space<vmem>>, vector<1x8x72xf32>
    %21 = vector.shape_cast %20 : vector<1x8x72xf32> to vector<8x72xf32>
    %c0_11 = arith.constant 0 : index
    %c0_12 = arith.constant 0 : index
    %22 = arith.index_cast %19 : i32 to index
    %23 = vector.load %arg2[%c0_11, %c0_12, %22] : memref<1x72x4608xf32, #tpu.memory_space<vmem>>, vector<1x72x1024xf32>
    %24 = vector.shape_cast %23 : vector<1x72x1024xf32> to vector<72x1024xf32>
    %cst_13 = arith.constant dense<0.000000e+00> : vector<8x1024xf32>
    %25 = tpu.matmul %21, %24, %cst_13 {dimension_numbers = #tpu.dot_dimension_numbers<[1], [0], [0], [1], [0, 0, 1, 1], [], []>} : vector<8x72xf32>, vector<72x1024xf32>, vector<8x1024xf32> -> vector<8x1024xf32>
    %26 = arith.addf %17, %25 : vector<8x1024xf32>
    %c0_14 = arith.constant 0 : index
    %c0_15 = arith.constant 0 : index
    %27 = vector.load %arg4[%c0_14, %c0_15] : memref<8x1xf32, #tpu.memory_space<vmem>>, vector<8x1xf32>
    %28 = vector.broadcast %27 : vector<8x1xf32> to vector<8x1024xf32>
    %29 = arith.addf %26, %28 : vector<8x1024xf32>
    %30 = math.exp %29 : vector<8x1024xf32>
    %cst_16 = arith.constant 1.000000e+00 : f32
    %31 = vector.broadcast %cst_16 : f32 to vector<8x1024xf32>
    %32 = arith.addf %31, %30 : vector<8x1024xf32>
    %33 = arith.mulf %32, %32 : vector<8x1024xf32>
    %cst_17 = arith.constant 1.000000e+00 : f32
    %34 = vector.broadcast %cst_17 : f32 to vector<8x1024xf32>
    %35 = arith.addf %33, %34 : vector<8x1024xf32>
    %cst_18 = arith.constant 2.000000e+00 : f32
    %36 = vector.broadcast %cst_18 : f32 to vector<8x1024xf32>
    %37 = arith.divf %36, %35 : vector<8x1024xf32>
    %cst_19 = arith.constant 1.000000e+00 : f32
    %38 = vector.broadcast %cst_19 : f32 to vector<8x1024xf32>
    %39 = arith.subf %38, %37 : vector<8x1024xf32>
    %40 = arith.mulf %29, %39 : vector<8x1024xf32>
    %41 = math.tanh %40 : vector<8x1024xf32>
    %c0_20 = arith.constant 0 : index
    %c0_21 = arith.constant 0 : index
    %c0_22 = arith.constant 0 : index
    %42 = vector.load %arg5[%c0_20, %c0_21, %c0_22] : memref<1x8x1024xf32, #tpu.memory_space<vmem>>, vector<1x8x1024xf32>
    %43 = vector.shape_cast %42 : vector<1x8x1024xf32> to vector<8x1024xf32>
    %44 = vector.shape_cast %41 : vector<8x1024xf32> to vector<1x8x1024xf32>
    tpu.vector_store %arg5[%c0_20, %c0_21, %c0_22], %44 {strides = array<i32>} : memref<1x8x1024xf32, #tpu.memory_space<vmem>>, vector<1x8x1024xf32>,
    return
  }
  func.func @transform_0(%arg0: i32, %arg1: i32) -> (i32, i32, i32) {
    %c0_i32 = arith.constant 0 : i32
    %c0_i32_0 = arith.constant 0 : i32
    %c0_i32_1 = arith.constant 0 : i32
    return %arg0, %c0_i32, %c0_i32_0 : i32, i32, i32
  }
  func.func @transform_1(%arg0: i32, %arg1: i32) -> (i32, i32, i32) {
    %c0_i32 = arith.constant 0 : i32
    %c0_i32_0 = arith.constant 0 : i32
    %c0_i32_1 = arith.constant 0 : i32
    %c0_i32_2 = arith.constant 0 : i32
    return %c0_i32, %c0_i32_0, %c0_i32_1 : i32, i32, i32
  }
  func.func @transform_2(%arg0: i32, %arg1: i32) -> (i32, i32) {
    %c0_i32 = arith.constant 0 : i32
    %c0_i32_0 = arith.constant 0 : i32
    %c0_i32_1 = arith.constant 0 : i32
    return %c0_i32, %c0_i32_0 : i32, i32
  }
  func.func @transform_3(%arg0: i32, %arg1: i32) -> (i32, i32, i32) {
    %c0_i32 = arith.constant 0 : i32
    %c0_i32_0 = arith.constant 0 : i32
    return %arg0, %c0_i32, %arg1 : i32, i32, i32
  }
}

</mosaic_0001>

<bundles_post_ra>
// kernel: conv3d_mish_tanh.1
= control target key start
LH: loop header
LB: loop body
LE: loop exit
PB: predicated region body
PF: predicated region fallthrough
CT: control target
= control target key end

     0   :  { %s1417_s12 = smov 0   ;;  %s1419_s13 = smov 0   ;;  %s1911_s0 = inlined_call_operand.vmem [shape: f32[2,72,4608], index: 0, kind: input, shape index: {}]   ;;  %s1912_s1 = inlined_call_operand.vmem [shape: f32[3,8,72], index: 1, kind: input, shape index: {}]   ;;  %s1913_s2 = inlined_call_operand.vmem [shape: f32[8,1], index: 2, kind: input, shape index: {}]   ;;  %s1914_s3 = inlined_call_operand.vmem [shape: f32[2,8,4096], index: 3, kind: output, shape index: {}]  }
   0x1   :  { %s1421_s14 = smov 0   ;;  %s1423_s15 = smov 0  }
   0x2   :  { %s1425_s16 = smov 0  }
   0x3 LB: > { %s22_s17 = sadd.s32 1, %s1386_s14  ;;  %s25_s18 = sadd.s32 1, %s1390_s15  ;;  %s1394_s16 = sphi %s1425_s16, %s13_s16   ;;  %s1390_s15 = sphi %s1423_s15, %s1925_s15   ;;  %s1386_s14 = sphi %s1421_s14, %s1924_s14   ;;  %s1382_s13 = sphi %s1419_s13, %s1923_s13   ;;  %s1378_s12 = sphi %s1417_s12, %s1922_s12  }
   0x4   : > { %p23_p0 = scmp.ge.s32.totalorder %s22_s17, 4  ;;  %p1228_p1 = scmp.ge.s32.totalorder %s1394_s16, 1 }
   0x5   : > { %p151_p2 = scmp.lt.s32.totalorder %s1394_s16, 9 }
   0x6   : > { %s1927_s17 = smov (%p23_p0, %s22_s17), 0  ;;  %s1929_s18 = smov (!%p23_p0, %s25_s18), %s1390_s15 }
   0x7   : > { %p152_p3 = pnand %p1228_p1, %p151_p2  ;;  %p27_p4 = scmp.ge.s32.totalorder %s1929_s18, 2 }
   0x8   : > { %p179_p5 = scmp.lt.s32.totalorder (!%p152_p3), %s1382_s13, 1  ;;  %s1450_s19 = sshll.u32 (!%p152_p3), %s1378_s12, 10 }
   0x9   : > { %s1931_s18 = smov (%p27_p4, %s1929_s18), 0  ;;  %155 = sbr.rel (%p152_p3) target bundleno = 327 (0x147), region = 32 }
   0xa   : > { %s272_s20 = sadd.s32 (!%p152_p3), 256, %s1450_s19  ;;  %s678_s24 = sadd.s32 (!%p152_p3), 512, %s1450_s19 }
   0xb   : > { %s275_s21 = sshra.s32 (!%p152_p3), %s272_s20, 7  ;;  %s681_s28 = sshra.s32 (!%p152_p3), %s678_s24, 7 }
   0xc   : > { %s1236_s23 = sshll.u32 (!%p152_p3), %s275_s21, 3  ;;  %s1254_s30 = sshll.u32 (!%p152_p3), %s681_s28, 3 }
   0xd   : > { %s196_s5 = sshra.s32 (!%p152_p3), %s1450_s19, 7 }
   0xe   : > { %s1933_s13 = smov (!%p179_p5, %s1382_s13), 1  ;;  %s1234_s6 = sshll.u32 %s196_s5, 3  ;;  %vm351_vm0 = vcmask 588800  }
   0xf   : > { %s1265_s22 = smul.u32 2592, %s1933_s13  ;;  %s1231_s25 = sshll.u32 %s1933_s13, 5 }
  0x11   : > { %s1460_s27 = scalar_lea.vmem %s1911_s0, %s1265_s22 }
  0x12   : > { %s1463_s29 = scalar_lea.vmem %s1460_s27, %s1236_s23  ;;  %s1472_s4 = scalar_lea.vmem %s1460_s27, %s1254_s30 }
  0x13   : > { %v343_v0 = vld [vmem:[%s1463_s29 + $0x900] sm:$0xff]  ;;  %v344_v1 = vld [vmem:[%s1463_s29 + $0x908] sm:$0xff]  ;;  %v345_v2 = vld [vmem:[%s1463_s29 + $0x910] sm:$0xff]  ;;  %s1542_s7 = scalar_lea.vmem %s1460_s27, %s1234_s6  ;;  %s1230_s23 = sshll.u32 %s1378_s12, 3 }
  0x14   : > { %362 = vmatpush.msra.mxu0 %v343_v0  ;;  %382 = vmatpush.msra.mxu1 %v344_v1  ;;  %v346_v3 = vld [vmem:[%s1463_s29 + $0x918] sm:$0xff]  ;;  %v335_v4 = vld [vmem:[%s1463_s29 + $0x7e0] sm:$0xff]  ;;  %v336_v5 = vld [vmem:[%s1463_s29 + $0x7e8] sm:$0xff]  ;;  %p1817_p6 = scmp.lt.s32.totalorder %s1230_s23, 31 }
  0x15   : > { %402 = vmatpush.msra.mxu2 %v345_v2  ;;  %422 = vmatpush.msra.mxu3 %v346_v3  ;;  %v337_v6 = vld [vmem:[%s1463_s29 + $0x7f0] sm:$0xff]  ;;  %v338_v7 = vld [vmem:[%s1463_s29 + $0x7f8] sm:$0xff]  ;;  %v327_v8 = vld [vmem:[%s1463_s29 + $0x6c0] sm:$0xff] }
  0x16   : > { %363 = vmatpush.msra.mxu0 %v335_v4  ;;  %383 = vmatpush.msra.mxu1 %v336_v5  ;;  %v328_v9 = vld [vmem:[%s1463_s29 + $0x6c8] sm:$0xff]  ;;  %v329_v10 = vld [vmem:[%s1463_s29 + $0x6d0] sm:$0xff]  ;;  %v330_v11 = vld [vmem:[%s1463_s29 + $0x6d8] sm:$0xff]  ;;  %s1935_s23 = smov (!%p1817_p6, %s1230_s23), 31 }
  0x17   : > { %403 = vmatpush.msra.mxu2 %v337_v6  ;;  %423 = vmatpush.msra.mxu3 %v338_v7  ;;  %v319_v12 = vld [vmem:[%s1463_s29 + $0x5a0] sm:$0xff]  ;;  %v320_v13 = vld [vmem:[%s1463_s29 + $0x5a8] sm:$0xff]  ;;  %v321_v14 = vld [vmem:[%s1463_s29 + $0x5b0] sm:$0xff]  ;;  %s190_s12 = sadd.s32 %s1231_s25, %s1935_s23 }
  0x18   : > { %364 = vmatpush.msra.mxu0 %v327_v8  ;;  %384 = vmatpush.msra.mxu1 %v328_v9  ;;  %v322_v15 = vld [vmem:[%s1463_s29 + $0x5b8] sm:$0xff]  ;;  %v311_v16 = vld [vmem:[%s1463_s29 + $0x480] sm:$0xff]  ;;  %v312_v17 = vld [vmem:[%s1463_s29 + $0x488] sm:$0xff]  ;;  %s1232_s13 = sshll.u32 %s190_s12, 3 }
  0x19   : > { %404 = vmatpush.msra.mxu2 %v329_v10  ;;  %424 = vmatpush.msra.mxu3 %v330_v11  ;;  %v313_v18 = vld [vmem:[%s1463_s29 + $0x490] sm:$0xff]  ;;  %v314_v19 = vld [vmem:[%s1463_s29 + $0x498] sm:$0xff]  ;;  %v303_v20 = vld [vmem:[%s1463_s29 + $0x360] sm:$0xff]  ;;  %s1865_s28 = scalar_lea.vmem %s1914_s3, %s1232_s13 }
  0x1a   : > { %365 = vmatpush.msra.mxu0 %v319_v12  ;;  %385 = vmatpush.msra.mxu1 %v320_v13  ;;  %v304_v21 = vld [vmem:[%s1463_s29 + $0x368] sm:$0xff]  ;;  %v305_v22 = vld [vmem:[%s1463_s29 + $0x370] sm:$0xff]  ;;  %v306_v23 = vld [vmem:[%s1463_s29 + $0x378] sm:$0xff] }
  0x1b   : > { %405 = vmatpush.msra.mxu2 %v321_v14  ;;  %425 = vmatpush.msra.mxu3 %v322_v15  ;;  %v295_v24 = vld [vmem:[%s1463_s29 + $0x240] sm:$0xff]  ;;  %v296_v25 = vld [vmem:[%s1463_s29 + $0x248] sm:$0xff]  ;;  %v297_v26 = vld [vmem:[%s1463_s29 + $0x250] sm:$0xff] }
  0x1c   : > { %366 = vmatpush.msra.mxu0 %v311_v16  ;;  %386 = vmatpush.msra.mxu1 %v312_v17  ;;  %v298_v27 = vld [vmem:[%s1463_s29 + $0x258] sm:$0xff]  ;;  %v287_v28 = vld [vmem:[%s1463_s29 + $0x120] sm:$0xff]  ;;  %v288_v29 = vld [vmem:[%s1463_s29 + $0x128] sm:$0xff] }
  0x1d   : > { %406 = vmatpush.msra.mxu2 %v313_v18  ;;  %426 = vmatpush.msra.mxu3 %v314_v19  ;;  %v289_v30 = vld [vmem:[%s1463_s29 + $0x130] sm:$0xff]  ;;  %v290_v31 = vld [vmem:[%s1463_s29 + $0x138] sm:$0xff]  ;;  %v279_v32 = vld [vmem:[%s1463_s29] sm:$0xff] }
  0x1e   : > { %367 = vmatpush.msra.mxu0 %v303_v20  ;;  %387 = vmatpush.msra.mxu1 %v304_v21  ;;  %v280_v33 = vld [vmem:[%s1463_s29 + $0x8] sm:$0xff]  ;;  %v281_v34 = vld [vmem:[%s1463_s29 + $0x10] sm:$0xff]  ;;  %v282_v35 = vld [vmem:[%s1463_s29 + $0x18] sm:$0xff] }
  0x1f   : > { %407 = vmatpush.msra.mxu2 %v305_v22  ;;  %427 = vmatpush.msra.mxu3 %v306_v23  ;;  %v347_v36 = vld [vmem:[%s1463_s29 + $0x920] sm:$0xff]  ;;  %v348_v37 = vld [vmem:[%s1463_s29 + $0x928] sm:$0xff]  ;;  %v349_v38 = vld [vmem:[%s1463_s29 + $0x930] sm:$0xff] }
  0x20   : > { %368 = vmatpush.msra.mxu0 %v295_v24  ;;  %388 = vmatpush.msra.mxu1 %v296_v25  ;;  %v350_v39 = vld [vmem:[%s1463_s29 + $0x938] sm:$0xff]  ;;  %v339_v40 = vld [vmem:[%s1463_s29 + $0x800] sm:$0xff]  ;;  %v340_v41 = vld [vmem:[%s1463_s29 + $0x808] sm:$0xff] }
  0x21   : > { %408 = vmatpush.msra.mxu2 %v297_v26  ;;  %428 = vmatpush.msra.mxu3 %v298_v27  ;;  %v341_v42 = vld [vmem:[%s1463_s29 + $0x810] sm:$0xff]  ;;  %v342_v43 = vld [vmem:[%s1463_s29 + $0x818] sm:$0xff]  ;;  %v331_v44 = vld [vmem:[%s1463_s29 + $0x6e0] sm:$0xff] }
  0x22   : > { %369 = vmatpush.msra.mxu0 %v287_v28  ;;  %389 = vmatpush.msra.mxu1 %v288_v29  ;;  %v332_v45 = vld [vmem:[%s1463_s29 + $0x6e8] sm:$0xff]  ;;  %v333_v46 = vld [vmem:[%s1463_s29 + $0x6f0] sm:$0xff]  ;;  %v334_v47 = vld [vmem:[%s1463_s29 + $0x6f8] sm:$0xff] }
  0x23   : > { %409 = vmatpush.msra.mxu2 %v289_v30  ;;  %429 = vmatpush.msra.mxu3 %v290_v31  ;;  %v323_v48 = vld [vmem:[%s1463_s29 + $0x5c0] sm:$0xff]  ;;  %v324_v49 = vld [vmem:[%s1463_s29 + $0x5c8] sm:$0xff]  ;;  %v325_v50 = vld [vmem:[%s1463_s29 + $0x5d0] sm:$0xff] }
  0x24   : > { %370 = vmatpush.msra.mxu0 %v279_v32  ;;  %390 = vmatpush.msra.mxu1 %v280_v33  ;;  %v326_v51 = vld [vmem:[%s1463_s29 + $0x5d8] sm:$0xff]  ;;  %v315_v52 = vld [vmem:[%s1463_s29 + $0x4a0] sm:$0xff]  ;;  %v316_v53 = vld [vmem:[%s1463_s29 + $0x4a8] sm:$0xff] }
  0x25   : > { %410 = vmatpush.msra.mxu2 %v281_v34  ;;  %430 = vmatpush.msra.mxu3 %v282_v35  ;;  %v317_v54 = vld [vmem:[%s1463_s29 + $0x4b0] sm:$0xff]  ;;  %v318_v55 = vld [vmem:[%s1463_s29 + $0x4b8] sm:$0xff]  ;;  %v307_v56 = vld [vmem:[%s1463_s29 + $0x380] sm:$0xff] }
  0x26   : > { %442 = vmatpush.msrb.mxu0 %v347_v36  ;;  %462 = vmatpush.msrb.mxu1 %v348_v37  ;;  %v308_v57 = vld [vmem:[%s1463_s29 + $0x388] sm:$0xff]  ;;  %v309_v58 = vld [vmem:[%s1463_s29 + $0x390] sm:$0xff]  ;;  %v310_v59 = vld [vmem:[%s1463_s29 + $0x398] sm:$0xff] }
  0x27   : > { %482 = vmatpush.msrb.mxu2 %v349_v38  ;;  %502 = vmatpush.msrb.mxu3 %v350_v39  ;;  %v299_v60 = vld [vmem:[%s1463_s29 + $0x260] sm:$0xff]  ;;  %v300_v61 = vld [vmem:[%s1463_s29 + $0x268] sm:$0xff]  ;;  %v301_v62 = vld [vmem:[%s1463_s29 + $0x270] sm:$0xff] }
  0x28   : > { %443 = vmatpush.msrb.mxu0 %v339_v40  ;;  %463 = vmatpush.msrb.mxu1 %v340_v41  ;;  %v302_v63 = vld [vmem:[%s1463_s29 + $0x278] sm:$0xff]  ;;  %v291_v0 = vld [vmem:[%s1463_s29 + $0x140] sm:$0xff]  ;;  %v292_v1 = vld [vmem:[%s1463_s29 + $0x148] sm:$0xff] }
  0x29   : > { %483 = vmatpush.msrb.mxu2 %v341_v42  ;;  %503 = vmatpush.msrb.mxu3 %v342_v43  ;;  %v293_v2 = vld [vmem:[%s1463_s29 + $0x150] sm:$0xff]  ;;  %v294_v3 = vld [vmem:[%s1463_s29 + $0x158] sm:$0xff]  ;;  %v283_v4 = vld [vmem:[%s1463_s29 + $0x20] sm:$0xff] }
  0x2a   : > { %444 = vmatpush.msrb.mxu0 %v331_v44  ;;  %464 = vmatpush.msrb.mxu1 %v332_v45  ;;  %v284_v5 = vld [vmem:[%s1463_s29 + $0x28] sm:$0xff]  ;;  %v285_v6 = vld [vmem:[%s1463_s29 + $0x30] sm:$0xff]  ;;  %v286_v7 = vld [vmem:[%s1463_s29 + $0x38] sm:$0xff] }
  0x2b   : > { %484 = vmatpush.msrb.mxu2 %v333_v46  ;;  %504 = vmatpush.msrb.mxu3 %v334_v47  ;;  %v1235_v8 = vld [vmem:[%s1912_s1 + $0x8] sm:$0xff]  ;;  %v264_v9 = vld [vmem:[%s1542_s7 + $0x900] sm:$0xff]  ;;  %v266_v11 = vld [vmem:[%s1542_s7 + $0x910] sm:$0xff] }
  0x2c   : > { %445 = vmatpush.msrb.mxu0 %v323_v48  ;;  %465 = vmatpush.msrb.mxu1 %v324_v49  ;;  %v265_v10 = vld [vmem:[%s1542_s7 + $0x908] sm:$0xff]  ;;  %v267_v12 = vld [vmem:[%s1542_s7 + $0x918] sm:$0xff]  ;;  %v256_v13 = vld [vmem:[%s1542_s7 + $0x7e0] sm:$0xff] }
  0x2d   : > { %485 = vmatpush.msrb.mxu2 %v325_v50  ;;  %505 = vmatpush.msrb.mxu3 %v326_v51  ;;  %v257_v14 = vld [vmem:[%s1542_s7 + $0x7e8] sm:$0xff]  ;;  %v258_v15 = vld [vmem:[%s1542_s7 + $0x7f0] sm:$0xff]  ;;  %v259_v16 = vld [vmem:[%s1542_s7 + $0x7f8] sm:$0xff] }
  0x2e   : > { %446 = vmatpush.msrb.mxu0 %v315_v52  ;;  %466 = vmatpush.msrb.mxu1 %v316_v53  ;;  %v248_v17 = vld [vmem:[%s1542_s7 + $0x6c0] sm:$0xff]  ;;  %v249_v18 = vld [vmem:[%s1542_s7 + $0x6c8] sm:$0xff]  ;;  %v250_v19 = vld [vmem:[%s1542_s7 + $0x6d0] sm:$0xff] }
  0x2f   : > { %486 = vmatpush.msrb.mxu2 %v317_v54  ;;  %506 = vmatpush.msrb.mxu3 %v318_v55  ;;  %v251_v20 = vld [vmem:[%s1542_s7 + $0x6d8] sm:$0xff]  ;;  %v240_v21 = vld [vmem:[%s1542_s7 + $0x5a0] sm:$0xff]  ;;  %v241_v22 = vld [vmem:[%s1542_s7 + $0x5a8] sm:$0xff] }
  0x30   : > { %447 = vmatpush.msrb.mxu0 %v307_v56  ;;  %467 = vmatpush.msrb.mxu1 %v308_v57  ;;  %v242_v23 = vld [vmem:[%s1542_s7 + $0x5b0] sm:$0xff]  ;;  %v243_v24 = vld [vmem:[%s1542_s7 + $0x5b8] sm:$0xff]  ;;  %v232_v25 = vld [vmem:[%s1542_s7 + $0x480] sm:$0xff] }
  0x31   : > { %487 = vmatpush.msrb.mxu2 %v309_v58  ;;  %507 = vmatpush.msrb.mxu3 %v310_v59  ;;  %v233_v26 = vld [vmem:[%s1542_s7 + $0x488] sm:$0xff]  ;;  %v234_v27 = vld [vmem:[%s1542_s7 + $0x490] sm:$0xff]  ;;  %v235_v28 = vld [vmem:[%s1542_s7 + $0x498] sm:$0xff] }
  0x32   : > { %448 = vmatpush.msrb.mxu0 %v299_v60  ;;  %468 = vmatpush.msrb.mxu1 %v300_v61  ;;  %v224_v29 = vld [vmem:[%s1542_s7 + $0x360] sm:$0xff]  ;;  %v225_v30 = vld [vmem:[%s1542_s7 + $0x368] sm:$0xff]  ;;  %v226_v31 = vld [vmem:[%s1542_s7 + $0x370] sm:$0xff] }
  0x33   : > { %488 = vmatpush.msrb.mxu2 %v301_v62  ;;  %508 = vmatpush.msrb.mxu3 %v302_v63  ;;  %v227_v32 = vld [vmem:[%s1542_s7 + $0x378] sm:$0xff]  ;;  %v216_v33 = vld [vmem:[%s1542_s7 + $0x240] sm:$0xff]  ;;  %v217_v34 = vld [vmem:[%s1542_s7 + $0x248] sm:$0xff] }
  0x34   : > { %449 = vmatpush.msrb.mxu0 %v291_v0  ;;  %469 = vmatpush.msrb.mxu1 %v292_v1  ;;  %v218_v35 = vld [vmem:[%s1542_s7 + $0x250] sm:$0xff]  ;;  %v219_v36 = vld [vmem:[%s1542_s7 + $0x258] sm:$0xff]  ;;  %v208_v37 = vld [vmem:[%s1542_s7 + $0x120] sm:$0xff] }
  0x35   : > { %489 = vmatpush.msrb.mxu2 %v293_v2  ;;  %509 = vmatpush.msrb.mxu3 %v294_v3  ;;  %v209_v38 = vld [vmem:[%s1542_s7 + $0x128] sm:$0xff]  ;;  %v210_v39 = vld [vmem:[%s1542_s7 + $0x130] sm:$0xff]  ;;  %v211_v40 = vld [vmem:[%s1542_s7 + $0x138] sm:$0xff] }
  0x36   : > { %450 = vmatpush.msrb.mxu0 %v283_v4  ;;  %470 = vmatpush.msrb.mxu1 %v284_v5  ;;  %v200_v41 = vld [vmem:[%s1542_s7] sm:$0xff]  ;;  %v201_v42 = vld [vmem:[%s1542_s7 + $0x8] sm:$0xff]  ;;  %v202_v43 = vld [vmem:[%s1542_s7 + $0x10] sm:$0xff] }
  0x37   : > { %490 = vmatpush.msrb.mxu2 %v285_v6  ;;  %510 = vmatpush.msrb.mxu3 %v286_v7  ;;  %v203_v44 = vld [vmem:[%s1542_s7 + $0x18] sm:$0xff]  ;;  %v1594_v45 = vld [vmem:[%s1912_s1] sm:$0xff]  ;;  %v269_v47 = vld [vmem:[%s1542_s7 + $0x928] sm:$0xff] }
  0x38   : > { %1237 = vmatmul.msk.f32.vlgmr.msra.gmra.mxu0 %vm351_vm0, %v1235_v8  ;;  %1238 = vmatmul.msk.f32.vlgmr.msra.gmra.mxu1 %vm351_vm0, %v1235_v8  ;;  %v268_v46 = vld [vmem:[%s1542_s7 + $0x920] sm:$0xff]  ;;  %v270_v48 = vld [vmem:[%s1542_s7 + $0x930] sm:$0xff]  ;;  %v271_v49 = vld [vmem:[%s1542_s7 + $0x938] sm:$0xff] }
  0x39   : > { %1239 = vmatmul.msk.f32.vlgmr.msra.gmra.mxu2 %vm351_vm0, %v1235_v8  ;;  %1240 = vmatmul.msk.f32.vlgmr.msra.gmra.mxu3 %vm351_vm0, %v1235_v8  ;;  %v260_v50 = vld [vmem:[%s1542_s7 + $0x800] sm:$0xff]  ;;  %v261_v51 = vld [vmem:[%s1542_s7 + $0x808] sm:$0xff]  ;;  %v262_v52 = vld [vmem:[%s1542_s7 + $0x810] sm:$0xff] }
  0x3a   : > { %525 = vmatpush.msra.mxu0 %v264_v9  ;;  %545 = vmatpush.msra.mxu1 %v265_v10  ;;  %v263_v53 = vld [vmem:[%s1542_s7 + $0x818] sm:$0xff]  ;;  %v252_v54 = vld [vmem:[%s1542_s7 + $0x6e0] sm:$0xff]  ;;  %v253_v55 = vld [vmem:[%s1542_s7 + $0x6e8] sm:$0xff] }
  0x3b   : > { %565 = vmatpush.msra.mxu2 %v266_v11  ;;  %585 = vmatpush.msra.mxu3 %v267_v12  ;;  %v254_v56 = vld [vmem:[%s1542_s7 + $0x6f0] sm:$0xff]  ;;  %v255_v57 = vld [vmem:[%s1542_s7 + $0x6f8] sm:$0xff]  ;;  %v244_v58 = vld [vmem:[%s1542_s7 + $0x5c0] sm:$0xff] }
  0x3c   : > { %526 = vmatpush.msra.mxu0 %v256_v13  ;;  %546 = vmatpush.msra.mxu1 %v257_v14  ;;  %v245_v59 = vld [vmem:[%s1542_s7 + $0x5c8] sm:$0xff]  ;;  %v246_v60 = vld [vmem:[%s1542_s7 + $0x5d0] sm:$0xff]  ;;  %v247_v61 = vld [vmem:[%s1542_s7 + $0x5d8] sm:$0xff] }
  0x3d   : > { %566 = vmatpush.msra.mxu2 %v258_v15  ;;  %586 = vmatpush.msra.mxu3 %v259_v16  ;;  %v236_v62 = vld [vmem:[%s1542_s7 + $0x4a0] sm:$0xff]  ;;  %v237_v63 = vld [vmem:[%s1542_s7 + $0x4a8] sm:$0xff]  ;;  %v238_v0 = vld [vmem:[%s1542_s7 + $0x4b0] sm:$0xff] }
  0x3e   : > { %527 = vmatpush.msra.mxu0 %v248_v17  ;;  %547 = vmatpush.msra.mxu1 %v249_v18  ;;  %v239_v1 = vld [vmem:[%s1542_s7 + $0x4b8] sm:$0xff]  ;;  %v228_v2 = vld [vmem:[%s1542_s7 + $0x380] sm:$0xff]  ;;  %v229_v3 = vld [vmem:[%s1542_s7 + $0x388] sm:$0xff] }
  0x3f   : > { %567 = vmatpush.msra.mxu2 %v250_v19  ;;  %587 = vmatpush.msra.mxu3 %v251_v20  ;;  %v230_v4 = vld [vmem:[%s1542_s7 + $0x390] sm:$0xff]  ;;  %v231_v5 = vld [vmem:[%s1542_s7 + $0x398] sm:$0xff]  ;;  %v220_v6 = vld [vmem:[%s1542_s7 + $0x260] sm:$0xff] }
  0x40   : > { %528 = vmatpush.msra.mxu0 %v240_v21  ;;  %548 = vmatpush.msra.mxu1 %v241_v22  ;;  %v221_v7 = vld [vmem:[%s1542_s7 + $0x268] sm:$0xff]  ;;  %v223_v9 = vld [vmem:[%s1542_s7 + $0x278] sm:$0xff]  ;;  %v212_v10 = vld [vmem:[%s1542_s7 + $0x140] sm:$0xff] }
  0x41   : > { %568 = vmatpush.msra.mxu2 %v242_v23  ;;  %588 = vmatpush.msra.mxu3 %v243_v24  ;;  %v213_v11 = vld [vmem:[%s1542_s7 + $0x148] sm:$0xff]  ;;  %v214_v12 = vld [vmem:[%s1542_s7 + $0x150] sm:$0xff]  ;;  %v215_v13 = vld [vmem:[%s1542_s7 + $0x158] sm:$0xff] }
  0x42   : > { %529 = vmatpush.msra.mxu0 %v232_v25  ;;  %549 = vmatpush.msra.mxu1 %v233_v26  ;;  %v204_v14 = vld [vmem:[%s1542_s7 + $0x20] sm:$0xff]  ;;  %v205_v15 = vld [vmem:[%s1542_s7 + $0x28] sm:$0xff]  ;;  %v206_v16 = vld [vmem:[%s1542_s7 + $0x30] sm:$0xff] }
  0x43   : > { %569 = vmatpush.msra.mxu2 %v234_v27  ;;  %589 = vmatpush.msra.mxu3 %v235_v28  ;;  %v207_v17 = vld [vmem:[%s1542_s7 + $0x38] sm:$0xff]  ;;  %v749_v18 = vld [vmem:[%s1472_s4 + $0x900] sm:$0xff]  ;;  %v750_v19 = vld [vmem:[%s1472_s4 + $0x908] sm:$0xff] }
  0x44   : > { %1241 = vmatmul.msk.f32.vlgmr.msrb.gmra.mxu0 %vm351_vm0, %v1235_v8  ;;  %1242 = vmatmul.msk.f32.vlgmr.msrb.gmra.mxu1 %vm351_vm0, %v1235_v8  ;;  %v751_v20 = vld [vmem:[%s1472_s4 + $0x910] sm:$0xff]  ;;  %v752_v21 = vld [vmem:[%s1472_s4 + $0x918] sm:$0xff]  ;;  %v741_v22 = vld [vmem:[%s1472_s4 + $0x7e0] sm:$0xff] }
  0x45   : > { %1243 = vmatmul.msk.f32.vlgmr.msrb.gmra.mxu2 %vm351_vm0, %v1235_v8  ;;  %1244 = vmatmul.msk.f32.vlgmr.msrb.gmra.mxu3 %vm351_vm0, %v1235_v8  ;;  %v222_v8 = vld [vmem:[%s1542_s7 + $0x270] sm:$0xff]  ;;  %v742_v23 = vld [vmem:[%s1472_s4 + $0x7e8] sm:$0xff]  ;;  %v744_v25 = vld [vmem:[%s1472_s4 + $0x7f8] sm:$0xff] }
  0x46   : > { %530 = vmatpush.msra.mxu0 %v224_v29  ;;  %550 = vmatpush.msra.mxu1 %v225_v30  ;;  %v743_v24 = vld [vmem:[%s1472_s4 + $0x7f0] sm:$0xff]  ;;  %v733_v26 = vld [vmem:[%s1472_s4 + $0x6c0] sm:$0xff]  ;;  %v734_v27 = vld [vmem:[%s1472_s4 + $0x6c8] sm:$0xff] }
  0x47   : > { %570 = vmatpush.msra.mxu2 %v226_v31  ;;  %590 = vmatpush.msra.mxu3 %v227_v32  ;;  %v735_v28 = vld [vmem:[%s1472_s4 + $0x6d0] sm:$0xff]  ;;  %v736_v29 = vld [vmem:[%s1472_s4 + $0x6d8] sm:$0xff]  ;;  %v725_v30 = vld [vmem:[%s1472_s4 + $0x5a0] sm:$0xff] }
  0x48   : > { %531 = vmatpush.msra.mxu0 %v216_v33  ;;  %551 = vmatpush.msra.mxu1 %v217_v34  ;;  %v726_v31 = vld [vmem:[%s1472_s4 + $0x5a8] sm:$0xff]  ;;  %v727_v32 = vld [vmem:[%s1472_s4 + $0x5b0] sm:$0xff]  ;;  %v728_v33 = vld [vmem:[%s1472_s4 + $0x5b8] sm:$0xff] }
  0x49   : > { %571 = vmatpush.msra.mxu2 %v218_v35  ;;  %591 = vmatpush.msra.mxu3 %v219_v36  ;;  %v717_v34 = vld [vmem:[%s1472_s4 + $0x480] sm:$0xff]  ;;  %v718_v35 = vld [vmem:[%s1472_s4 + $0x488] sm:$0xff]  ;;  %v719_v36 = vld [vmem:[%s1472_s4 + $0x490] sm:$0xff] }
  0x4a   : > { %532 = vmatpush.msra.mxu0 %v208_v37  ;;  %552 = vmatpush.msra.mxu1 %v209_v38  ;;  %v720_v37 = vld [vmem:[%s1472_s4 + $0x498] sm:$0xff]  ;;  %v709_v38 = vld [vmem:[%s1472_s4 + $0x360] sm:$0xff] }
  0x4b   : > { %572 = vmatpush.msra.mxu2 %v210_v39  ;;  %592 = vmatpush.msra.mxu3 %v211_v40  ;;  %v710_v39 = vld [vmem:[%s1472_s4 + $0x368] sm:$0xff]  ;;  %v711_v40 = vld [vmem:[%s1472_s4 + $0x370] sm:$0xff] }
  0x4c   : > { %533 = vmatpush.msra.mxu0 %v200_v41  ;;  %553 = vmatpush.msra.mxu1 %v201_v42  ;;  %v712_v41 = vld [vmem:[%s1472_s4 + $0x378] sm:$0xff]  ;;  %v701_v42 = vld [vmem:[%s1472_s4 + $0x240] sm:$0xff] }
  0x4d   : > { %573 = vmatpush.msra.mxu2 %v202_v43  ;;  %593 = vmatpush.msra.mxu3 %v203_v44  ;;  %v702_v43 = vld [vmem:[%s1472_s4 + $0x248] sm:$0xff]  ;;  %v703_v44 = vld [vmem:[%s1472_s4 + $0x250] sm:$0xff] }
  0x4e   : > { %1245 = vmatmul.msk.f32.vlgmr.msra.gmra.mxu0 %vm351_vm0, %v1594_v45  ;;  %1246 = vmatmul.msk.f32.vlgmr.msra.gmra.mxu1 %vm351_vm0, %v1594_v45 }
  0x4f   : > { %1247 = vmatmul.msk.f32.vlgmr.msra.gmra.mxu2 %vm351_vm0, %v1594_v45  ;;  %1248 = vmatmul.msk.f32.vlgmr.msra.gmra.mxu3 %vm351_vm0, %v1594_v45 }
  0x50   : > { %605 = vmatpush.msrb.mxu0 %v268_v46  ;;  %625 = vmatpush.msrb.mxu1 %v269_v47  ;;  %v693_v46 = vld [vmem:[%s1472_s4 + $0x120] sm:$0xff]  ;;  %v694_v47 = vld [vmem:[%s1472_s4 + $0x128] sm:$0xff] }
  0x51   : > { %645 = vmatpush.msrb.mxu2 %v270_v48  ;;  %665 = vmatpush.msrb.mxu3 %v271_v49  ;;  %v695_v48 = vld [vmem:[%s1472_s4 + $0x130] sm:$0xff]  ;;  %v696_v49 = vld [vmem:[%s1472_s4 + $0x138] sm:$0xff] }
  0x52   : > { %606 = vmatpush.msrb.mxu0 %v260_v50  ;;  %626 = vmatpush.msrb.mxu1 %v261_v51  ;;  %v685_v50 = vld [vmem:[%s1472_s4] sm:$0xff]  ;;  %v686_v51 = vld [vmem:[%s1472_s4 + $0x8] sm:$0xff] }
  0x53   : > { %646 = vmatpush.msrb.mxu2 %v262_v52  ;;  %666 = vmatpush.msrb.mxu3 %v263_v53  ;;  %v687_v52 = vld [vmem:[%s1472_s4 + $0x10] sm:$0xff]  ;;  %v688_v53 = vld [vmem:[%s1472_s4 + $0x18] sm:$0xff] }
  0x54   : > { %607 = vmatpush.msrb.mxu0 %v252_v54  ;;  %627 = vmatpush.msrb.mxu1 %v253_v55  ;;  %v1687_v54 = vld [vmem:[%s1912_s1 + $0x10] sm:$0xff]  ;;  %v753_v55 = vld [vmem:[%s1472_s4 + $0x920] sm:$0xff] }
  0x55   : > { %647 = vmatpush.msrb.mxu2 %v254_v56  ;;  %667 = vmatpush.msrb.mxu3 %v255_v57  ;;  %v754_v56 = vld [vmem:[%s1472_s4 + $0x928] sm:$0xff]  ;;  %v755_v57 = vld [vmem:[%s1472_s4 + $0x930] sm:$0xff] }
  0x56   : > { %608 = vmatpush.msrb.mxu0 %v244_v58  ;;  %628 = vmatpush.msrb.mxu1 %v245_v59  ;;  %v756_v58 = vld [vmem:[%s1472_s4 + $0x938] sm:$0xff]  ;;  %v745_v59 = vld [vmem:[%s1472_s4 + $0x800] sm:$0xff] }
  0x57   : > { %648 = vmatpush.msrb.mxu2 %v246_v60  ;;  %668 = vmatpush.msrb.mxu3 %v247_v61  ;;  %v746_v60 = vld [vmem:[%s1472_s4 + $0x808] sm:$0xff]  ;;  %v747_v61 = vld [vmem:[%s1472_s4 + $0x810] sm:$0xff] }
  0x58   : > { %609 = vmatpush.msrb.mxu0 %v236_v62  ;;  %629 = vmatpush.msrb.mxu1 %v237_v63  ;;  %v748_v62 = vld [vmem:[%s1472_s4 + $0x818] sm:$0xff]  ;;  %v737_v63 = vld [vmem:[%s1472_s4 + $0x6e0] sm:$0xff] }
  0x59   : > { %649 = vmatpush.msrb.mxu2 %v238_v0  ;;  %669 = vmatpush.msrb.mxu3 %v239_v1  ;;  %v738_v0 = vld [vmem:[%s1472_s4 + $0x6e8] sm:$0xff]  ;;  %v739_v1 = vld [vmem:[%s1472_s4 + $0x6f0] sm:$0xff] }
  0x5a   : > { %610 = vmatpush.msrb.mxu0 %v228_v2  ;;  %630 = vmatpush.msrb.mxu1 %v229_v3  ;;  %v740_v2 = vld [vmem:[%s1472_s4 + $0x6f8] sm:$0xff]  ;;  %v729_v3 = vld [vmem:[%s1472_s4 + $0x5c0] sm:$0xff] }
  0x5b   : > { %650 = vmatpush.msrb.mxu2 %v230_v4  ;;  %670 = vmatpush.msrb.mxu3 %v231_v5  ;;  %v730_v4 = vld [vmem:[%s1472_s4 + $0x5c8] sm:$0xff]  ;;  %v731_v5 = vld [vmem:[%s1472_s4 + $0x5d0] sm:$0xff] }
  0x5c   : > { %611 = vmatpush.msrb.mxu0 %v220_v6  ;;  %631 = vmatpush.msrb.mxu1 %v221_v7  ;;  %v732_v6 = vld [vmem:[%s1472_s4 + $0x5d8] sm:$0xff]  ;;  %v721_v7 = vld [vmem:[%s1472_s4 + $0x4a0] sm:$0xff] }
  0x5d   : > { %651 = vmatpush.msrb.mxu2 %v222_v8  ;;  %671 = vmatpush.msrb.mxu3 %v223_v9  ;;  %v722_v8 = vld [vmem:[%s1472_s4 + $0x4a8] sm:$0xff]  ;;  %v723_v9 = vld [vmem:[%s1472_s4 + $0x4b0] sm:$0xff] }
  0x5e   : > { %612 = vmatpush.msrb.mxu0 %v212_v10  ;;  %632 = vmatpush.msrb.mxu1 %v213_v11  ;;  %v724_v10 = vld [vmem:[%s1472_s4 + $0x4b8] sm:$0xff]  ;;  %v713_v11 = vld [vmem:[%s1472_s4 + $0x380] sm:$0xff] }
  0x5f   : > { %652 = vmatpush.msrb.mxu2 %v214_v12  ;;  %672 = vmatpush.msrb.mxu3 %v215_v13  ;;  %v714_v12 = vld [vmem:[%s1472_s4 + $0x388] sm:$0xff]  ;;  %v715_v13 = vld [vmem:[%s1472_s4 + $0x390] sm:$0xff] }
  0x60   : > { %613 = vmatpush.msrb.mxu0 %v204_v14  ;;  %633 = vmatpush.msrb.mxu1 %v205_v15  ;;  %v716_v14 = vld [vmem:[%s1472_s4 + $0x398] sm:$0xff]  ;;  %v705_v15 = vld [vmem:[%s1472_s4 + $0x260] sm:$0xff] }
  0x61   : > { %653 = vmatpush.msrb.mxu2 %v206_v16  ;;  %673 = vmatpush.msrb.mxu3 %v207_v17  ;;  %v706_v16 = vld [vmem:[%s1472_s4 + $0x268] sm:$0xff]  ;;  %v707_v17 = vld [vmem:[%s1472_s4 + $0x270] sm:$0xff] }
  0x62   : > { %1249 = vmatmul.msk.f32.vlgmr.msrb.gmra.mxu0 %vm351_vm0, %v1594_v45  ;;  %1250 = vmatmul.msk.f32.vlgmr.msrb.gmra.mxu1 %vm351_vm0, %v1594_v45 }
  0x63   : > { %1251 = vmatmul.msk.f32.vlgmr.msrb.gmra.mxu2 %vm351_vm0, %v1594_v45  ;;  %1252 = vmatmul.msk.f32.vlgmr.msrb.gmra.mxu3 %vm351_vm0, %v1594_v45  ;;  %v704_v45 = vld [vmem:[%s1472_s4 + $0x258] sm:$0xff] }
  0x64   : > { %767 = vmatpush.msra.mxu0 %v749_v18  ;;  %787 = vmatpush.msra.mxu1 %v750_v19  ;;  %v708_v18 = vld [vmem:[%s1472_s4 + $0x278] sm:$0xff]  ;;  %v928_v19 = vld [vmem:[%s1913_s2] sm:$0xff] }
  0x65   : > { %807 = vmatpush.msra.mxu2 %v751_v20  ;;  %827 = vmatpush.msra.mxu3 %v752_v21  ;;  %v1396_v20 = vmov 0   ;;  %v697_v21 = vld [vmem:[%s1472_s4 + $0x140] sm:$0xff] }
  0x66   : > { %768 = vmatpush.msra.mxu0 %v741_v22  ;;  %788 = vmatpush.msra.mxu1 %v742_v23  ;;  %v698_v22 = vld [vmem:[%s1472_s4 + $0x148] sm:$0xff]  ;;  %v699_v23 = vld [vmem:[%s1472_s4 + $0x150] sm:$0xff] }
  0x67   : > { %808 = vmatpush.msra.mxu2 %v743_v24  ;;  %828 = vmatpush.msra.mxu3 %v744_v25  ;;  %v700_v24 = vld [vmem:[%s1472_s4 + $0x158] sm:$0xff]  ;;  %v689_v25 = vld [vmem:[%s1472_s4 + $0x20] sm:$0xff] }
  0x68   : > { %769 = vmatpush.msra.mxu0 %v733_v26  ;;  %789 = vmatpush.msra.mxu1 %v734_v27  ;;  %v690_v26 = vld [vmem:[%s1472_s4 + $0x28] sm:$0xff]  ;;  %v691_v27 = vld [vmem:[%s1472_s4 + $0x30] sm:$0xff] }
  0x69   : > { %809 = vmatpush.msra.mxu2 %v735_v28  ;;  %829 = vmatpush.msra.mxu3 %v736_v29  ;;  %v692_v28 = vld [vmem:[%s1472_s4 + $0x38] sm:$0xff] }
  0x6a   : > { %770 = vmatpush.msra.mxu0 %v725_v30  ;;  %790 = vmatpush.msra.mxu1 %v726_v31 }
  0x6b   : > { %810 = vmatpush.msra.mxu2 %v727_v32  ;;  %830 = vmatpush.msra.mxu3 %v728_v33 }
  0x6c   : > { %771 = vmatpush.msra.mxu0 %v717_v34  ;;  %791 = vmatpush.msra.mxu1 %v718_v35 }
  0x6d   : > { %811 = vmatpush.msra.mxu2 %v719_v36  ;;  %831 = vmatpush.msra.mxu3 %v720_v37 }
  0x6e   : > { %772 = vmatpush.msra.mxu0 %v709_v38  ;;  %792 = vmatpush.msra.mxu1 %v710_v39 }
  0x6f   : > { %812 = vmatpush.msra.mxu2 %v711_v40  ;;  %832 = vmatpush.msra.mxu3 %v712_v41 }
  0x70   : > { %773 = vmatpush.msra.mxu0 %v701_v42  ;;  %793 = vmatpush.msra.mxu1 %v702_v43 }
  0x71   : > { %813 = vmatpush.msra.mxu2 %v703_v44  ;;  %833 = vmatpush.msra.mxu3 %v704_v45 }
  0x72   : > { %774 = vmatpush.msra.mxu0 %v693_v46  ;;  %794 = vmatpush.msra.mxu1 %v694_v47 }
  0x73   : > { %814 = vmatpush.msra.mxu2 %v695_v48  ;;  %834 = vmatpush.msra.mxu3 %v696_v49 }
  0x74   : > { %775 = vmatpush.msra.mxu0 %v685_v50  ;;  %795 = vmatpush.msra.mxu1 %v686_v51 }
  0x75   : > { %815 = vmatpush.msra.mxu2 %v687_v52  ;;  %835 = vmatpush.msra.mxu3 %v688_v53 }
  0x76   : > { %1255 = vmatmul.msk.f32.vlgmr.msra.gmra.mxu0 %vm351_vm0, %v1687_v54  ;;  %1256 = vmatmul.msk.f32.vlgmr.msra.gmra.mxu1 %vm351_vm0, %v1687_v54 }
  0x77   : > { %1257 = vmatmul.msk.f32.vlgmr.msra.gmra.mxu2 %vm351_vm0, %v1687_v54  ;;  %1258 = vmatmul.msk.f32.vlgmr.msra.gmra.mxu3 %vm351_vm0, %v1687_v54 }
  0x78   : > { %847 = vmatpush.msrb.mxu0 %v753_v55  ;;  %867 = vmatpush.msrb.mxu1 %v754_v56 }
  0x79   : > { %887 = vmatpush.msrb.mxu2 %v755_v57  ;;  %907 = vmatpush.msrb.mxu3 %v756_v58 }
  0x7a   : > { %848 = vmatpush.msrb.mxu0 %v745_v59  ;;  %868 = vmatpush.msrb.mxu1 %v746_v60 }
  0x7b   : > { %888 = vmatpush.msrb.mxu2 %v747_v61  ;;  %908 = vmatpush.msrb.mxu3 %v748_v62 }
  0x7c   : > { %849 = vmatpush.msrb.mxu0 %v737_v63  ;;  %869 = vmatpush.msrb.mxu1 %v738_v0 }
  0x7d   : > { %889 = vmatpush.msrb.mxu2 %v739_v1  ;;  %909 = vmatpush.msrb.mxu3 %v740_v2 }
  0x7e   : > { %850 = vmatpush.msrb.mxu0 %v729_v3  ;;  %870 = vmatpush.msrb.mxu1 %v730_v4 }
  0x7f   : > { %890 = vmatpush.msrb.mxu2 %v731_v5  ;;  %910 = vmatpush.msrb.mxu3 %v732_v6 }
  0x80   : > { %851 = vmatpush.msrb.mxu0 %v721_v7  ;;  %871 = vmatpush.msrb.mxu1 %v722_v8 }
  0x81   : > { %891 = vmatpush.msrb.mxu2 %v723_v9  ;;  %911 = vmatpush.msrb.mxu3 %v724_v10 }
  0x82   : > { %852 = vmatpush.msrb.mxu0 %v713_v11  ;;  %872 = vmatpush.msrb.mxu1 %v714_v12 }
  0x83   : > { %892 = vmatpush.msrb.mxu2 %v715_v13  ;;  %912 = vmatpush.msrb.mxu3 %v716_v14 }
  0x84   : > { %1307 = vset.pattern.permute.xlu0 %v1396_v20  ;;  %853 = vmatpush.msrb.mxu0 %v705_v15 }
  0x85   : > { %873 = vmatpush.msrb.mxu1 %v706_v16  ;;  %893 = vmatpush.msrb.mxu2 %v707_v17 }
  0x86   : > { %913 = vmatpush.msrb.mxu3 %v708_v18  ;;  %931 = vperm.xlu0 %1307, %v928_v19  }
  0x87   : > { %854 = vmatpush.msrb.mxu0 %v697_v21  ;;  %874 = vmatpush.msrb.mxu1 %v698_v22 }
  0x88   : > { %894 = vmatpush.msrb.mxu2 %v699_v23  ;;  %914 = vmatpush.msrb.mxu3 %v700_v24 }
  0x89   : > { %855 = vmatpush.msrb.mxu0 %v689_v25  ;;  %875 = vmatpush.msrb.mxu1 %v690_v26 }
  0x8a   : > { %895 = vmatpush.msrb.mxu2 %v691_v27  ;;  %915 = vmatpush.msrb.mxu3 %v692_v28 }
  0x8b   : > { %1259 = vmatmul.msk.f32.vlgmr.msrb.gmra.mxu0 %vm351_vm0, %v1687_v54  ;;  %1260 = vmatmul.msk.f32.vlgmr.msrb.gmra.mxu1 %vm351_vm0, %v1687_v54 }
  0x8c   : > { %1261 = vmatmul.msk.f32.vlgmr.msrb.gmra.mxu2 %vm351_vm0, %v1687_v54  ;;  %1262 = vmatmul.msk.f32.vlgmr.msrb.gmra.mxu3 %vm351_vm0, %v1687_v54 }
  0xb5   : > { %v372_v29 = vpop.f32.mrf.mxu0  ;;  %v392_v30 = vpop.f32.mrf.mxu1 }
  0xbc   : > { %v412_v31 = vpop.f32.mrf.mxu2  ;;  %v432_v32 = vpop.f32.mrf.mxu3 }
  0xc1   : > { %v452_v33 = vpop.f32.mrf.mxu0  ;;  %v472_v34 = vpop.f32.mrf.mxu1 }
  0xc8   : > { %v1744_v35 = vpop.f32.mrf.mxu2  ;;  %v1746_v36 = vpop.f32.mrf.mxu3 }
  0xcb   : > { %v535_v37 = vpop.f32.mrf.mxu0  ;;  %v555_v38 = vpop.f32.mrf.mxu1 }
  0xcc   : > { %v536_v45 = vadd.f32 %v535_v37, %v372_v29  ;;  %v556_v46 = vadd.f32 %v555_v38, %v392_v30 }
  0xd2   : > { %v575_v39 = vpop.f32.mrf.mxu2  ;;  %v595_v40 = vpop.f32.mrf.mxu3 }
  0xd3   : > { %v576_v52 = vadd.f32 %v575_v39, %v412_v31  ;;  %v596_v53 = vadd.f32 %v595_v40, %v432_v32 }
  0xdf   : > { %v615_v41 = vpop.f32.mrf.mxu0  ;;  %v635_v42 = vpop.f32.mrf.mxu1 }
  0xe0   : > { %v616_v8 = vadd.f32 %v615_v41, %v452_v33  ;;  %v636_v9 = vadd.f32 %v635_v42, %v472_v34 }
  0xe6   : > { %v655_v43 = vpop.f32.mrf.mxu2  ;;  %v675_v44 = vpop.f32.mrf.mxu3 }
  0xe7   : > { %v656_v29 = vadd.f32 %v655_v43, %v1744_v35  ;;  %v676_v33 = vadd.f32 %v675_v44, %v1746_v36 }
  0xf3   : > { %v777_v47 = vpop.f32.mrf.mxu0  ;;  %v797_v48 = vpop.f32.mrf.mxu1 }
  0xf4   : > { %v920_v49 = vadd.f32 %v777_v47, %v536_v45  ;;  %v921_v50 = vadd.f32 %v797_v48, %v556_v46 }
  0xf8   : > { %v1748_v51 = vpop.permute.xlu0 %931 }
  0xf9   : > { %v1751_v54 = vadd.f32 %v1748_v51, %v920_v49  ;;  %v1754_v55 = vadd.f32 %v1748_v51, %v921_v50 }
  0xfa   : > { %v817_v56 = vpop.f32.mrf.mxu2  ;;  %v837_v57 = vpop.f32.mrf.mxu3 }
  0xfb   : > { %v942_v58 = vmul.f32 1.442695, %v1751_v54  ;;  %v944_v59 = vmul.f32 1.442695, %v1754_v55  ;;  %v922_v60 = vadd.f32 %v817_v56, %v576_v52  ;;  %v923_v61 = vadd.f32 %v837_v57, %v596_v53 }
  0xfd   : > { %1308 = vpow2.f32 %v942_v58  ;;  %v1759_v62 = vadd.f32 %v1748_v51, %v922_v60  ;;  %v1762_v63 = vadd.f32 %v1748_v51, %v923_v61 }
  0xfe   : > { %1310 = vpow2.f32 %v944_v59 }
  0xff   : > { %v946_v0 = vmul.f32 1.442695, %v1759_v62  ;;  %v948_v1 = vmul.f32 1.442695, %v1762_v63 }
 0x101   : > { %1312 = vpow2.f32 %v946_v0 }
 0x102   : > { %1314 = vpow2.f32 %v948_v1 }
 0x103   : > { %v1309_v2 = vpop.eup %1308 }
 0x104   : > { %v1311_v3 = vpop.eup %1310  ;;  %v958_v4 = vadd.f32 1.0, %v1309_v2 }
 0x105   : > { %v959_v5 = vadd.f32 1.0, %v1311_v3 }
 0x106   : > { %v966_v6 = vmul.f32 %v958_v4, %v958_v4 }
 0x107   : > { %v1313_v7 = vpop.eup %1312  ;;  %v967_v10 = vmul.f32 %v959_v5, %v959_v5 }
 0x108   : > { %v1315_v11 = vpop.eup %1314  ;;  %v1766_v12 = vadd.f32 1.0, %v966_v6  ;;  %v960_v13 = vadd.f32 1.0, %v1313_v7  ;;  %v857_v14 = vpop.f32.mrf.mxu0 }
 0x109   : > { %v877_v15 = vpop.f32.mrf.mxu1  ;;  %v1768_v16 = vadd.f32 1.0, %v967_v10  ;;  %v961_v17 = vadd.f32 1.0, %v1315_v11  ;;  %v924_v18 = vadd.f32 %v857_v14, %v616_v8 }
 0x10a   : > { %v925_v19 = vadd.f32 %v877_v15, %v636_v9  ;;  %1316 = vrcp.f32 %v1766_v12  ;;  %v968_v20 = vmul.f32 %v960_v13, %v960_v13  ;;  %v991_v22 = vand.u32 2147483647, %v1766_v12 }
 0x10b   : > { %1318 = vrcp.f32 %v1768_v16  ;;  %v969_v21 = vmul.f32 %v961_v17, %v961_v17  ;;  %v1774_v23 = vadd.f32 %v1748_v51, %v924_v18  ;;  %v993_v25 = vand.u32 2147483648, %v1766_v12 }
 0x10c   : > { %v1777_v24 = vadd.f32 %v1748_v51, %v925_v19  ;;  %v1006_v26 = vand.u32 2147483647, %v1768_v16  ;;  %v1781_v27 = vadd.f32 1.0, %v968_v20  ;;  %v1008_v30 = vand.u32 2147483648, %v1768_v16 }
 0x10d   : > { %v1783_v28 = vadd.f32 1.0, %v969_v21  ;;  %v950_v31 = vmul.f32 1.442695, %v1774_v23  ;;  %vm987_vm1 = vweird.f32 %v1766_v12  ;;  %vm1793_vm2 = vcmp.eq.f32.partialorder %v991_v22, 8.507059e+37 }
 0x10e   : > { %1320 = vrcp.f32 %v1781_v27  ;;  %v952_v34 = vmul.f32 1.442695, %v1777_v24  ;;  %vm1002_vm3 = vweird.f32 %v1768_v16  ;;  %v994_v40 = vor.u32 1.1754944e-38, %v993_v25 }
 0x10f   : > { %1322 = vrcp.f32 %v1783_v28  ;;  %v897_v35 = vpop.f32.mrf.mxu2  ;;  %v917_v36 = vpop.f32.mrf.mxu3  ;;  %vm1800_vm4 = vcmp.eq.f32.partialorder %v1006_v26, 8.507059e+37  ;;  %v1023_v43 = vand.u32 2147483648, %v1781_v27  ;;  %v1009_v45 = vor.u32 1.1754944e-38, %v1008_v30 }
 0x110   : > { %v1317_v32 = vpop.eup %1316  ;;  %v1021_v46 = vand.u32 2147483647, %v1781_v27  ;;  %1324 = vpow2.f32 %v950_v31  ;;  %v926_v48 = vadd.f32 %v897_v35, %v656_v29  ;;  %v927_v49 = vadd.f32 %v917_v36, %v676_v33 }
 0x111   : > { %v1319_v37 = vpop.eup %1318  ;;  %v983_v38 = vmul.f32 %v1317_v32, %v1766_v12  ;;  %1326 = vpow2.f32 %v952_v34  ;;  %vm988_vm5 = vweird.f32 %v1317_v32  ;;  %vm1017_vm7 = vweird.f32 %v1781_v27 }
 0x112   : > { %v998_v41 = vmul.f32 %v1319_v37, %v1768_v16  ;;  %vm1003_vm6 = vweird.f32 %v1319_v37  ;;  %v1024_v56 = vor.u32 1.1754944e-38, %v1023_v43  ;;  %vm1032_vm8 = vweird.f32 %v1783_v28  ;;  %vm989_vm10 = vmor %vm987_vm1, %vm988_vm5 }
 0x113   : > { %v984_v44 = vsub.f32 1.0, %v983_v38  ;;  %v1810_v57 = vadd.f32 %v1748_v51, %v926_v48  ;;  %v1813_v58 = vadd.f32 %v1748_v51, %v927_v49  ;;  %vm1822_vm9 = vcmp.eq.f32.partialorder %v1021_v46, 8.507059e+37  ;;  %vm1004_vm12 = vmor %vm1002_vm3, %vm1003_vm6 }
 0x114   : > { %v999_v47 = vsub.f32 1.0, %v998_v41  ;;  %v1321_v52 = vpop.eup %1320  ;;  %v1036_v1 = vand.u32 2147483647, %v1783_v28  ;;  %v1038_v2 = vand.u32 2147483648, %v1783_v28 }
 0x115   : > { %v985_v50 = vmul.f32 %v1317_v32, %v984_v44  ;;  %v1323_v59 = vpop.eup %1322  ;;  %v1013_v61 = vmul.f32 %v1321_v52, %v1781_v27  ;;  %vm1018_vm11 = vweird.f32 %v1321_v52  ;;  %v954_v4 = vmul.f32 1.442695, %v1810_v57 }
 0x116   : > { %v1000_v53 = vmul.f32 %v1319_v37, %v999_v47  ;;  %v1028_v3 = vmul.f32 %v1323_v59, %v1783_v28  ;;  %v1325_v5 = vpop.eup %1324  ;;  %vm1033_vm13 = vweird.f32 %v1323_v59  ;;  %v956_v8 = vmul.f32 1.442695, %v1813_v58  ;;  %vm1019_vm14 = vmor %vm1017_vm7, %vm1018_vm11 }
 0x117   : > { %v986_v60 = vadd.f32 %v1317_v32, %v985_v50  ;;  %v1014_v7 = vsub.f32 1.0, %v1013_v61  ;;  %v1327_v9 = vpop.eup %1326  ;;  %v962_v13 = vadd.f32 1.0, %v1325_v5  ;;  %1328 = vpow2.f32 %v954_v4  ;;  %vm1034_vm0 = vmor %vm1032_vm8, %vm1033_vm13 }
 0x118   : > { %v1001_v51 = vadd.f32 %v1319_v37, %v1000_v53  ;;  %v1029_v12 = vsub.f32 1.0, %v1028_v3  ;;  %v963_v17 = vadd.f32 1.0, %v1327_v9  ;;  %1330 = vpow2.f32 %v956_v8 }
 0x119   : > { %v990_v6 = vsel %vm989_vm10, %v1317_v32, %v986_v60  ;;  %v1015_v16 = vmul.f32 %v1321_v52, %v1014_v7  ;;  %v970_v20 = vmul.f32 %v962_v13, %v962_v13  ;;  %vm1037_vm15 = vcmp.eq.f32.partialorder %v1036_v1, 8.507059e+37 }
 0x11a   : > { %v995_v10 = vsel %vm1793_vm2, %v994_v40, %v990_v6  ;;  %v1005_v11 = vsel %vm1004_vm12, %v1319_v37, %v1001_v51  ;;  %v1030_v19 = vmul.f32 %v1323_v59, %v1029_v12  ;;  %v971_v25 = vmul.f32 %v963_v17, %v963_v17 }
 0x11b   : > { %v996_v14 = vmul.f32 2.0, %v995_v10  ;;  %v1010_v15 = vsel %vm1800_vm4, %v1009_v45, %v1005_v11  ;;  %v1016_v22 = vadd.f32 %v1321_v52, %v1015_v16  ;;  %v1849_v30 = vadd.f32 1.0, %v970_v20 }
 0x11c   : > { %v1011_v18 = vmul.f32 2.0, %v1010_v15  ;;  %v1031_v29 = vadd.f32 %v1323_v59, %v1030_v19  ;;  %v1039_v33 = vor.u32 1.1754944e-38, %v1038_v2  ;;  %v1855_v34 = vadd.f32 1.0, %v971_v25 }
 0x11d   : > { %v1102_v21 = vsub.f32 1.0, %v996_v14  ;;  %v1020_v32 = vsel %vm1019_vm14, %v1321_v52, %v1016_v22  ;;  %1332 = vrcp.f32 %v1849_v30  ;;  %v1051_v61 = vand.u32 2147483647, %v1849_v30 }
 0x11e   : > { %v1103_v26 = vsub.f32 1.0, %v1011_v18  ;;  %v1025_v27 = vsel %vm1822_vm9, %v1024_v56, %v1020_v32  ;;  %v1035_v38 = vsel %vm1034_vm0, %v1323_v59, %v1031_v29  ;;  %vm1047_vm2 = vweird.f32 %v1849_v30 }
 0x11f   : > { %v1110_v31 = vmul.f32 %v1102_v21, %v1751_v54  ;;  %v1026_v39 = vmul.f32 2.0, %v1025_v27  ;;  %v1040_v35 = vsel %vm1037_vm15, %v1039_v33, %v1035_v38  ;;  %v1329_v54 = vpop.eup %1328  ;;  %v1068_v51 = vand.u32 2147483648, %v1855_v34 }
 0x120   : > { %v1111_v37 = vmul.f32 %v1103_v26, %v1754_v55  ;;  %v1041_v36 = vmul.f32 2.0, %v1040_v35  ;;  %v1331_v28 = vpop.eup %1330  ;;  %v964_v42 = vadd.f32 1.0, %v1329_v54  ;;  %v1066_v6 = vand.u32 2147483647, %v1855_v34 }
 0x121   : > { %1334 = vtanh.f32 %v1110_v31  ;;  %v1104_v40 = vsub.f32 1.0, %v1026_v39  ;;  %v965_v43 = vadd.f32 1.0, %v1331_v28  ;;  %vm1052_vm5 = vcmp.eq.f32.partialorder %v1051_v61, 8.507059e+37 }
 0x122   : > { %1336 = vtanh.f32 %v1111_v37  ;;  %v1105_v41 = vsub.f32 1.0, %v1041_v36  ;;  %v972_v48 = vmul.f32 %v964_v42, %v964_v42  ;;  %vm1062_vm6 = vweird.f32 %v1855_v34 }
 0x123   : > { %1338 = vrcp.f32 %v1855_v34  ;;  %v1112_v55 = vmul.f32 %v1104_v40, %v1759_v62  ;;  %v1333_v44 = vpop.eup %1332  ;;  %v973_v50 = vmul.f32 %v965_v43, %v965_v43  ;;  %v1053_v62 = vand.u32 2147483648, %v1849_v30 }
 0x124   : > { %v1113_v45 = vmul.f32 %v1105_v41, %v1762_v63  ;;  %v1043_v47 = vmul.f32 %v1333_v44, %v1849_v30  ;;  %v980_v56 = vadd.f32 1.0, %v972_v48  ;;  %vm1048_vm1 = vweird.f32 %v1333_v44 }
 0x125   : > { %1340 = vtanh.f32 %v1112_v55  ;;  %v1874_v60 = vadd.f32 1.0, %v973_v50  ;;  %vm1049_vm3 = vmor %vm1047_vm2, %vm1048_vm1  ;;  %v1054_v4 = vor.u32 1.1754944e-38, %v1053_v62  ;;  %v1069_v12 = vor.u32 1.1754944e-38, %v1068_v51 }
 0x126   : > { %1342 = vtanh.f32 %v1113_v45  ;;  %v1044_v53 = vsub.f32 1.0, %v1043_v47  ;;  %vm1067_vm8 = vcmp.eq.f32.partialorder %v1066_v6, 8.507059e+37  ;;  %v1081_v22 = vand.u32 2147483647, %v980_v56 }
 0x127   : > { %v1335_v46 = vpop.eup %1334  ;;  %1344 = vrcp.f32 %v980_v56  ;;  %v1083_v25 = vand.u32 2147483648, %v980_v56  ;;  %v1098_v31 = vand.u32 2147483648, %v1874_v60  ;;  %v1096_v33 = vand.u32 2147483647, %v1874_v60 }
 0x128   : > { %v1337_v49 = vpop.eup %1336  ;;  %1126 = vst [vmem:[%s1865_s28] sm:$0xff] %v1335_v46  ;;  %v1045_v63 = vmul.f32 %v1333_v44, %v1044_v53  ;;  %1346 = vrcp.f32 %v1874_v60  ;;  %vm1077_vm11 = vweird.f32 %v980_v56  ;;  %vm1092_vm13 = vweird.f32 %v1874_v60 }
 0x129   : > { %v1339_v52 = vpop.eup %1338  ;;  %1127 = vst [vmem:[%s1865_s28 + $0x8] sm:$0xff] %v1337_v49  ;;  %vm1082_vm14 = vcmp.eq.f32.partialorder %v1081_v22, 8.507059e+37  ;;  %v1099_v39 = vor.u32 1.1754944e-38, %v1098_v31  ;;  %vm1097_vm0 = vcmp.eq.f32.partialorder %v1096_v33, 8.507059e+37 }
 0x12a   : > { %v1058_v59 = vmul.f32 %v1339_v52, %v1855_v34  ;;  %v1046_v2 = vadd.f32 %v1333_v44, %v1045_v63  ;;  %vm1063_vm4 = vweird.f32 %v1339_v52 }
 0x12b   : > { %v1341_v1 = vpop.eup %1340  ;;  %vm1064_vm7 = vmor %vm1062_vm6, %vm1063_vm4 }
 0x12c   : > { %v1059_v0 = vsub.f32 1.0, %v1058_v59  ;;  %v1343_v3 = vpop.eup %1342  ;;  %1128 = vst [vmem:[%s1865_s28 + $0x10] sm:$0xff] %v1341_v1  ;;  %v1050_v7 = vsel %vm1049_vm3, %v1333_v44, %v1046_v2 }
 0x12d   : > { %1129 = vst [vmem:[%s1865_s28 + $0x18] sm:$0xff] %v1343_v3  ;;  %v1055_v8 = vsel %vm1052_vm5, %v1054_v4, %v1050_v7  ;;  %v1345_v10 = vpop.eup %1344 }
 0x12e   : > { %v1060_v5 = vmul.f32 %v1339_v52, %v1059_v0  ;;  %v1056_v11 = vmul.f32 2.0, %v1055_v8  ;;  %v1347_v13 = vpop.eup %1346  ;;  %v1073_v15 = vmul.f32 %v1345_v10, %v980_v56  ;;  %vm1078_vm9 = vweird.f32 %v1345_v10 }
 0x12f   : > { %v1088_v18 = vmul.f32 %v1347_v13, %v1874_v60  ;;  %vm1093_vm10 = vweird.f32 %v1347_v13  ;;  %vm1079_vm12 = vmor %vm1077_vm11, %vm1078_vm9 }
 0x130   : > { %v1061_v9 = vadd.f32 %v1339_v52, %v1060_v5  ;;  %v1106_v16 = vsub.f32 1.0, %v1056_v11  ;;  %v1074_v20 = vsub.f32 1.0, %v1073_v15  ;;  %vm1094_vm15 = vmor %vm1092_vm13, %vm1093_vm10 }
 0x131   : > { %v1089_v26 = vsub.f32 1.0, %v1088_v18 }
 0x132   : > { %v1065_v14 = vsel %vm1064_vm7, %v1339_v52, %v1061_v9  ;;  %v1114_v21 = vmul.f32 %v1106_v16, %v1774_v23  ;;  %v1075_v30 = vmul.f32 %v1345_v10, %v1074_v20  ;;  %v1084_v23 = vor.u32 1.1754944e-38, %v1083_v25 }
 0x133   : > { %v1070_v17 = vsel %vm1067_vm8, %v1069_v12, %v1065_v14  ;;  %v1090_v32 = vmul.f32 %v1347_v13, %v1089_v26 }
 0x134   : > { %v1071_v19 = vmul.f32 2.0, %v1070_v17  ;;  %1348 = vtanh.f32 %v1114_v21  ;;  %v1076_v37 = vadd.f32 %v1345_v10, %v1075_v30 }
 0x135   : > { %v1091_v27 = vadd.f32 %v1347_v13, %v1090_v32 }
 0x136   : > { %v1107_v29 = vsub.f32 1.0, %v1071_v19  ;;  %v1080_v38 = vsel %vm1079_vm12, %v1345_v10, %v1076_v37 }
 0x137   : > { %v1085_v35 = vsel %vm1082_vm14, %v1084_v23, %v1080_v38  ;;  %v1095_v54 = vsel %vm1094_vm15, %v1347_v13, %v1091_v27 }
 0x138   : > { %v1115_v34 = vmul.f32 %v1107_v29, %v1777_v24  ;;  %v1086_v36 = vmul.f32 2.0, %v1085_v35  ;;  %v1100_v24 = vsel %vm1097_vm0, %v1099_v39, %v1095_v54 }
 0x139   : > { %v1101_v40 = vmul.f32 2.0, %v1100_v24 }
 0x13a   : > { %1350 = vtanh.f32 %v1115_v34  ;;  %v1349_v28 = vpop.eup %1348  ;;  %v1108_v41 = vsub.f32 1.0, %v1086_v36 }
 0x13b   : > { %1130 = vst [vmem:[%s1865_s28 + $0x20] sm:$0xff] %v1349_v28  ;;  %v1109_v55 = vsub.f32 1.0, %v1101_v40 }
 0x13c   : > { %v1116_v43 = vmul.f32 %v1108_v41, %v1810_v57 }
 0x13d   : > { %v1117_v44 = vmul.f32 %v1109_v55, %v1813_v58 }
 0x13e   : > { %1352 = vtanh.f32 %v1116_v43 }
 0x13f   : > { %1354 = vtanh.f32 %v1117_v44 }
 0x140   : > { %v1351_v42 = vpop.eup %1350 }
 0x141   : > { %1131 = vst [vmem:[%s1865_s28 + $0x28] sm:$0xff] %v1351_v42 }
 0x144   : > { %v1353_v45 = vpop.eup %1352 }
 0x145   : > { %v1355_v46 = vpop.eup %1354  ;;  %1132 = vst [vmem:[%s1865_s28 + $0x30] sm:$0xff] %v1353_v45 }
 0x146   : > { %1133 = vst [vmem:[%s1865_s28 + $0x38] sm:$0xff] %v1355_v46 }
 0x147 PF: > { %s13_s16 = sadd.s32 1, %s1394_s16   ;;  %s1922_s12 = smov %s1386_s14 }
 0x148   : > { %p10_p7 = scmp.ge.s32.totalorder %s13_s16, 10   ;;  %s1923_s13 = smov %s1390_s15 }
 0x149   : > { %s1924_s14 = smov %s1927_s17  ;;  %s1925_s15 = smov %s1931_s18 }
 0x14a   :  { %12 = sbr.rel (!%p10_p7) target bundleno = 3 (0x3), region = 67 }

</bundles_post_ra>
